<compile_context>
chip_gen: v7x
topology: tpu7x:2x2x1
jax: 0.10.0
libtpu: 0.0.40
codegen_flags: <defaults>
</compile_context>

<pallas_src>
import functools

import jax
import jax.numpy as jnp
import numpy as np
from jax import lax
from jax.experimental import pallas as pl
from jax.experimental.pallas import tpu as pltpu


CELLCODE = '0|31|213'
CHANNELS = (8, 16)
NUM_CLASSES = 10

C_ROWS = 16          # every activation / weight is padded to 16 channel rows
TAPS = 9             # 3x3 conv / pool taps


# ----------------------------------------------------------------------------
# pltpu.roll sign-convention probe (robust across JAX versions)
# ----------------------------------------------------------------------------
_ROLL_SIGN = None    # +1 -> pltpu.roll matches jnp.roll (out[i] = x[i - shift])


def _init_roll_convention():
    """Run a tiny probe kernel once (outside jit) to pin down roll semantics."""
    global _ROLL_SIGN
    if _ROLL_SIGN is not None:
        return

    def probe(x_ref, o_ref):
        o_ref[...] = pltpu.roll(x_ref[...], 1, axis=1)

    x = jnp.arange(8 * 128, dtype=jnp.float32).reshape(8, 128)
    out = pl.pallas_call(
        probe, out_shape=jax.ShapeDtypeStruct((8, 128), jnp.float32))(x)
    _ROLL_SIGN = 1 if bool(jnp.allclose(out, jnp.roll(x, 1, axis=1))) else -1


def _roll_lanes(x, s, n):
    """out[:, p] = x[:, (p + s) % n]  (s, n are static Python ints; lane roll)."""
    s = s % n
    if s == 0:
        return x
    if _ROLL_SIGN is None:
        raise RuntimeError('_init_roll_convention() must run before tracing')
    shift = (-s) % n if _ROLL_SIGN == 1 else s
    return pltpu.roll(x, shift, axis=1)


# ----------------------------------------------------------------------------
# In-kernel building blocks (operate on (C_ROWS, N*H*W) f32 values)
# ----------------------------------------------------------------------------
def _spatial_masks(H, W, N):
    """9 f32 masks (C_ROWS, N*H*W): 1.0 where tap (dh,dw) is in-bounds."""
    HW, NHW = H * W, N * H * W
    lane = lax.broadcasted_iota(jnp.int32, (C_ROWS, NHW), 1)
    h = (lane % HW) // W
    w = lane % W
    masks = []
    for dh in (-1, 0, 1):
        for dw in (-1, 0, 1):
            hh, ww = h + dh, w + dw
            ok = (hh >= 0) & (hh < H) & (ww >= 0) & (ww < W)
            masks.append(ok.astype(jnp.float32))
    return masks


def _conv3x3(xv, w_ref, b_ref, W, NHW, masks, taps_ref, relu_in):
    """[ReLU ->] Conv3x3(pad=1) -> BN  as one im2col matmul.

    xv: (C_ROWS, NHW).  w_ref: (C_ROWS, 9*C_ROWS) with BN scale folded in.
    b_ref: (C_ROWS, 1).  Taps (rolled + boundary-masked views of xv) are
    written into the VMEM scratch row-block t*C_ROWS:(t+1)*C_ROWS.
    """
    if relu_in:
        xv = jnp.maximum(xv, 0.0)
    t = 0
    for dh in (-1, 0, 1):
        for dw in (-1, 0, 1):
            tap = _roll_lanes(xv, dh * W + dw, NHW) * masks[t]
            taps_ref[t * C_ROWS:(t + 1) * C_ROWS, 0:NHW] = tap
            t += 1
    tap_mat = taps_ref[:, 0:NHW]                               # (144, NHW)
    y = jnp.dot(w_ref[...], tap_mat, preferred_element_type=jnp.float32)
    return y + b_ref[...]


def _avgpool3x3(xv, W, NHW, masks):
    """nn.AvgPool2d(3, stride=1, padding=1, count_include_pad=False)."""
    acc = None
    cnt = None
    t = 0
    for dh in (-1, 0, 1):
        for dw in (-1, 0, 1):
            v = _roll_lanes(xv, dh * W + dw, NHW) * masks[t]
            acc = v if acc is None else acc + v
            cnt = masks[t] if cnt is None else cnt + masks[t]
            t += 1
    return acc / cnt


def _normal_cell(x0, r, name, W, NHW, masks, taps_ref, edges, num_nodes):
    nodes = [x0]
    for dst in range(1, num_nodes):
        acc = None
        for (src, d, op) in edges:
            if d != dst or op == 0:          # op 0 = zero edge: contributes nothing
                continue
            if op == 1:                      # skip connect
                v = nodes[src]
            elif op == 2:                    # 3x3 avg pool
                v = _avgpool3x3(nodes[src], W, NHW, masks)
            else:                            # op 3: ReLU - Conv3x3 - BN
                v = _conv3x3(nodes[src], r[f'{name}_e{src}{d}_w'],
                             r[f'{name}_e{src}{d}_b'], W, NHW, masks,
                             taps_ref, relu_in=True)
            acc = v if acc is None else acc + v
        nodes.append(acc if acc is not None else jnp.zeros_like(x0))
    return nodes[-1]


# ----------------------------------------------------------------------------
# The fused whole-network kernel
# ----------------------------------------------------------------------------
def _fused_kernel(*refs, names, batch, h0, w0, num_nodes, edges):
    *in_refs, o_ref, taps_ref = refs
    assert len(in_refs) == len(names)
    r = dict(zip(names, in_refs))

    n = batch
    h1, w1 = h0 // 2, w0 // 2
    nhw0, nhw1 = n * h0 * w0, n * h1 * w1

    masks0 = _spatial_masks(h0, w0, n)       # hoisted: reused by every op at 16x16
    masks1 = _spatial_masks(h1, w1, n)       # reused by every op at 8x8

    # FirstCell: Conv3x3 + BN (scale folded into weights).
    x = _conv3x3(r['x'][...], r['stem_w'], r['stem_b'], w0, nhw0, masks0,
                 taps_ref, relu_in=False)

    # Block 0: NormalCell.
    x = _normal_cell(x, r, 'cell0', w0, nhw0, masks0, taps_ref, edges, num_nodes)

    # ReductionCell (ResNet basic block, stride 2).
    sel = r['sel'][...]                                   # (nhw0, nhw1) 0/1 select
    m = _conv3x3(x, r['red_a_w'], r['red_a_b'], w0, nhw0, masks0, taps_ref,
                 relu_in=True)
    m = jnp.dot(m, sel, preferred_element_type=jnp.float32)      # stride-2 subsample
    m = _conv3x3(m, r['red_b_w'], r['red_b_b'], w1, nhw1, masks1, taps_ref,
                 relu_in=True)
    # shortcut: Conv1x1 then AvgPool2x2 (commutes): sum 4 shifted copies, select, /4
    z = jnp.dot(r['red_sc_w'][...], x, preferred_element_type=jnp.float32)
    zsum = z
    for off in (1, w0, w0 + 1):
        zsum = zsum + _roll_lanes(z, off, nhw0)
    x = m + 0.25 * jnp.dot(zsum, sel, preferred_element_type=jnp.float32)

    # Block 1: NormalCell.
    x = _normal_cell(x, r, 'cell1', w1, nhw1, masks1, taps_ref, edges, num_nodes)

    # LastCell: BN + ReLU + global average pool + Linear.
    y = jnp.maximum(x * r['last_s'][...] + r['last_b'][...], 0.0)
    g = jnp.dot(y, r['gap'][...], preferred_element_type=jnp.float32)   # (C_ROWS, N)
    o_ref[...] = (jnp.dot(r['fc_wT'][...], g, preferred_element_type=jnp.float32)
                  + r['fc_b'][...])                                     # (classes, N)


# ----------------------------------------------------------------------------
# Glue: fold weights / BN into MXU-friendly 2-D matrices, build constants
# ----------------------------------------------------------------------------
def _fold_conv3x3(w, scale, bias):
    """HWIO (3,3,Cin,Cout) conv + eval-BN -> (C_ROWS, 9*C_ROWS) weight with the
    BN scale folded in, plus (C_ROWS, 1) bias.  Column order = t*C_ROWS + ci,
    matching the in-kernel im2col row order."""
    k, _, cin, cout = w.shape
    assert k == 3
    wt = jnp.transpose(w.reshape(k * k, cin, cout), (2, 0, 1))   # (Cout, 9, Cin)
    wt = wt * scale[0][:, None, None]
    wp = jnp.zeros((C_ROWS, k * k, C_ROWS), jnp.float32).at[:cout, :, :cin].set(wt)
    bc = jnp.zeros((C_ROWS, 1), jnp.float32).at[:cout, 0].set(bias[0])
    return wp.reshape(C_ROWS, k * k * C_ROWS), bc


def _fold_conv1x1(w):
    """HWIO (1,1,Cin,Cout) -> (C_ROWS, C_ROWS) [rows=Cout, cols=Cin], no BN."""
    cin, cout = w.shape[2], w.shape[3]
    wt = jnp.transpose(w[0, 0], (1, 0))                          # (Cout, Cin)
    return jnp.zeros((C_ROWS, C_ROWS), jnp.float32).at[:cout, :cin].set(wt)


def _bn_cols(scale, bias):
    c = scale.shape[1]
    s = jnp.zeros((C_ROWS, 1), jnp.float32).at[:c, 0].set(scale[0])
    b = jnp.zeros((C_ROWS, 1), jnp.float32).at[:c, 0].set(bias[0])
    return s, b


def _stride2_select(N, H, W):
    """(N*H*W, N*(H/2)*(W/2)) 0/1 matrix selecting the even (h, w) positions."""
    HW = H * W
    H2, W2 = H // 2, W // 2
    p = np.arange(N * HW)
    q = np.arange(N * H2 * W2)
    pn, pr = p // HW, p % HW
    ph, pw = pr // W, pr % W
    qn, qr = q // (H2 * W2), q % (H2 * W2)
    qh, qw = qr // W2, qr % W2
    sel = ((pn[:, None] == qn[None, :])
           & (ph[:, None] == 2 * qh[None, :])
           & (pw[:, None] == 2 * qw[None, :])).astype(np.float32)
    return jnp.asarray(sel)


def _gap_matrix(N, HW):
    """(N*HW, N) matrix: per-batch global average pooling as a matmul."""
    q = np.arange(N * HW)
    n = np.arange(N)
    g = (q[:, None] // HW == n[None, :]).astype(np.float32) / float(HW)
    return jnp.asarray(g)


def nashpo_forward(params, x_nchw, edges):
    """Fused Pallas forward.  x_nchw: (N, 3, H, W) PyTorch-style input."""
    n, cin, h, w = x_nchw.shape
    assert h % 2 == 0 and w % 2 == 0 and max(CHANNELS) <= C_ROWS
    nhw0 = n * h * w
    num_nodes = len(CELLCODE.split('|')) + 1

    # layout: channels (padded to 16) on sublanes, batch*spatial on lanes.
    x2 = jnp.transpose(x_nchw, (1, 0, 2, 3)).astype(jnp.float32).reshape(cin, nhw0)
    x16 = jnp.zeros((C_ROWS, nhw0), jnp.float32).at[:cin].set(x2)

    names, arrs = ['x'], [x16]

    def add_conv(name, w_, s_, b_):
        wm, bc = _fold_conv3x3(w_, s_, b_)
        names.extend([name + '_w', name + '_b'])
        arrs.extend([wm, bc])

    add_conv('stem', params['stem_w'], params['stem_s'], params['stem_b'])
    for cell in ('cell0', 'cell1'):
        for (src, dst, op) in edges:
            if op == 3:
                pre = f'{cell}_e{src}{dst}'
                add_conv(pre, params[pre + '_w'], params[pre + '_s'],
                         params[pre + '_b'])
    add_conv('red_a', params['red_a_w'], params['red_a_s'], params['red_a_b'])
    add_conv('red_b', params['red_b_w'], params['red_b_s'], params['red_b_b'])

    names.append('red_sc_w'); arrs.append(_fold_conv1x1(params['red_sc_w']))
    names.append('sel');      arrs.append(_stride2_select(n, h, w))
    names.append('gap');      arrs.append(_gap_matrix(n, (h // 2) * (w // 2)))
    s_l, b_l = _bn_cols(params['last_s'], params['last_b'])
    names.extend(['last_s', 'last_b']); arrs.extend([s_l, b_l])
    names.extend(['fc_wT', 'fc_b'])
    arrs.extend([jnp.transpose(params['fc_w']).astype(jnp.float32),
                 jnp.transpose(params['fc_b']).astype(jnp.float32)])

    kernel = functools.partial(
        _fused_kernel, names=tuple(names), batch=n, h0=h, w0=w,
        num_nodes=num_nodes, edges=tuple(edges))

    out = pl.pallas_call(
        kernel,
        out_shape=jax.ShapeDtypeStruct((NUM_CLASSES, n), jnp.float32),
        grid=(1,),
        in_specs=[pl.BlockSpec(a.shape, lambda i: (0, 0)) for a in arrs],
        out_specs=pl.BlockSpec((NUM_CLASSES, n), lambda i: (0, 0)),
        scratch_shapes=[pltpu.VMEM((TAPS * C_ROWS, nhw0), jnp.float32)],
        compiler_params=pltpu.CompilerParams(
            dimension_semantics=("arbitrary",)),
    )(*arrs)
    # layout adapter only: (classes, N) -> (N, classes)
    return out.T


# ----------------------------------------------------------------------------
# Architecture definition / deterministic parameter init (BN folded to eval)
# ----------------------------------------------------------------------------
def parse_cellcode(code):
    """'0|31|213' -> list of (src, dst, op)."""
    edges = []
    for dst, grp in enumerate(code.split('|'), start=1):
        for src, ch in enumerate(grp):
            edges.append((src, dst, int(ch)))
    return edges


def init_params(key, edges, in_ch=3, channels=CHANNELS, num_classes=NUM_CLASSES):
    keys = iter(jax.random.split(key, 64))

    def conv_w(k, kk, cin, cout):
        return (jax.random.normal(k, (kk, kk, cin, cout), jnp.float32)
                / jnp.sqrt(float(kk * kk * cin)))

    def bn(k, c):
        k1, k2 = jax.random.split(k)
        scale = 1.0 + 0.1 * jax.random.normal(k1, (1, c), jnp.float32)
        bias = 0.1 * jax.random.normal(k2, (1, c), jnp.float32)
        return scale, bias

    c0, c1 = channels
    p = {}
    p['stem_w'] = conv_w(next(keys), 3, in_ch, c0)
    p['stem_s'], p['stem_b'] = bn(next(keys), c0)
    for name, c in (('cell0', c0), ('cell1', c1)):
        for (src, dst, op) in edges:
            if op == 3:
                pre = f'{name}_e{src}{dst}'
                p[pre + '_w'] = conv_w(next(keys), 3, c, c)
                p[pre + '_s'], p[pre + '_b'] = bn(next(keys), c)
    p['red_a_w'] = conv_w(next(keys), 3, c0, c1)
    p['red_a_s'], p['red_a_b'] = bn(next(keys), c1)
    p['red_b_w'] = conv_w(next(keys), 3, c1, c1)
    p['red_b_s'], p['red_b_b'] = bn(next(keys), c1)
    p['red_sc_w'] = conv_w(next(keys), 1, c0, c1)
    p['last_s'], p['last_b'] = bn(next(keys), c1)
    p['fc_w'] = (jax.random.normal(next(keys), (c1, num_classes), jnp.float32)
                 / jnp.sqrt(float(c1)))
    p['fc_b'] = 0.01 * jax.random.normal(next(keys), (1, num_classes), jnp.float32)
    return p


# ----------------------------------------------------------------------------
# Pure-JAX reference (for correctness checking only)
# ----------------------------------------------------------------------------
def _ref_conv(x, w, s, b, *, pad, stride, relu_in=False):
    if relu_in:
        x = jnp.maximum(x, 0.0)
    y = lax.conv_general_dilated(x, w, (stride, stride),
                                 [(pad, pad), (pad, pad)],
                                 dimension_numbers=('NHWC', 'HWIO', 'NHWC'))
    return y * s[0] + b[0]


def _ref_avgpool3(x):
    pad = [(0, 0), (1, 1), (1, 1), (0, 0)]
    ssum = lax.reduce_window(x, 0.0, lax.add, (1, 3, 3, 1), (1, 1, 1, 1), pad)
    cnt = lax.reduce_window(jnp.ones_like(x), 0.0, lax.add,
                            (1, 3, 3, 1), (1, 1, 1, 1), pad)
    return ssum / cnt


def _ref_op(x, op, p, prefix):
    if op == 0:
        return jnp.zeros_like(x)
    if op == 1:
        return x
    if op == 2:
        return _ref_avgpool3(x)
    return _ref_conv(x, p[prefix + '_w'], p[prefix + '_s'], p[prefix + '_b'],
                     pad=1, stride=1, relu_in=True)


def _ref_normal_cell(x, p, name, edges):
    nodes = [x]
    for dst in range(1, len(CELLCODE.split('|')) + 1):
        acc = None
        for (src, d, op) in edges:
            if d != dst:
                continue
            v = _ref_op(nodes[src], op, p, f'{name}_e{src}{d}')
            acc = v if acc is None else acc + v
        nodes.append(acc)
    return nodes[-1]


def ref_forward(p, x_nchw, edges):
    x = jnp.transpose(x_nchw, (0, 2, 3, 1)).astype(jnp.float32)
    x = _ref_conv(x, p['stem_w'], p['stem_s'], p['stem_b'], pad=1, stride=1)
    x = _ref_normal_cell(x, p, 'cell0', edges)
    m = _ref_conv(x, p['red_a_w'], p['red_a_s'], p['red_a_b'],
                  pad=1, stride=2, relu_in=True)
    m = _ref_conv(m, p['red_b_w'], p['red_b_s'], p['red_b_b'],
                  pad=1, stride=1, relu_in=True)
    pooled = lax.reduce_window(x, 0.0, lax.add, (1, 2, 2, 1), (1, 2, 2, 1),
                               'VALID') / 4.0
    short = lax.conv_general_dilated(pooled, p['red_sc_w'], (1, 1),
                                     [(0, 0), (0, 0)],
                                     dimension_numbers=('NHWC', 'HWIO', 'NHWC'))
    x = m + short
    x = _ref_normal_cell(x, p, 'cell1', edges)
    y = jnp.maximum(x * p['last_s'][0] + p['last_b'][0], 0.0)
    g = jnp.mean(y, axis=(1, 2))
    return jnp.dot(g, p['fc_w']) + p['fc_b'][0]


# ----------------------------------------------------------------------------
if __name__ == "__main__":
    _init_roll_convention()                 # probe pltpu.roll semantics once

    key = jax.random.PRNGKey(0)
    k_param, k_x = jax.random.split(key)

    edges = parse_cellcode(CELLCODE)
    params = init_params(k_param, edges)

    # PyTorch-style NCHW input, small shapes (batch=2, 3 channels, 16x16).
    x = jax.random.normal(k_x, (2, 3, 16, 16), jnp.float32)

    fwd = jax.jit(functools.partial(nashpo_forward, edges=edges))
    out = jax.block_until_ready(fwd(params, x))

    assert out.shape == (2, NUM_CLASSES), out.shape
    ref = jax.block_until_ready(ref_forward(params, x, edges))
    assert jnp.allclose(out, ref, atol=2e-3, rtol=2e-3), (
        float(jnp.max(jnp.abs(out - ref))))

    print("KERNEL_OK")
</pallas_src>

<mosaic_0001>
module attributes {stable_mosaic.version = 11 : i64} {
  func.func @probe(%arg0: memref<8x128xf32, #tpu.memory_space<vmem>>, %arg1: memref<8x128xf32, #tpu.memory_space<vmem>>) attributes {dimension_semantics = [], scalar_prefetch = 0 : i64, scratch_operands = 0 : i64, tpu.core_type = #tpu.core_type<tc>} {
    %c0 = arith.constant 0 : index
    %c0_0 = arith.constant 0 : index
    %0 = vector.load %arg0[%c0, %c0_0] : memref<8x128xf32, #tpu.memory_space<vmem>>, vector<8x128xf32>
    %c1_i32 = arith.constant 1 : i32
    %1 = tpu.dynamic_rotate %0 by %c1_i32 dim 1 : vector<8x128xf32>, i32 -> vector<8x128xf32>
    %c0_1 = arith.constant 0 : index
    %c0_2 = arith.constant 0 : index
    %2 = vector.load %arg1[%c0_1, %c0_2] : memref<8x128xf32, #tpu.memory_space<vmem>>, vector<8x128xf32>
    tpu.vector_store %arg1[%c0_1, %c0_2], %1 {strides = array<i32>} : memref<8x128xf32, #tpu.memory_space<vmem>>, vector<8x128xf32>,
    return
  }
}

</mosaic_0001>

<bundles_post_ra>
// kernel: tpu_custom_call.1
= control target key start
LH: loop header
LB: loop body
LE: loop exit
PB: predicated region body
PF: predicated region fallthrough
CT: control target
= control target key end

     0   :  { %6 = vsyncpa [#allocation3], 0  ;;  %s128_s0 = inlined_call_operand.hbm [shape: f32[8,128], index: 0, kind: input, shape index: {}]   ;;  %s129_s1 = inlined_call_operand.hbm [shape: f32[8,128], index: 1, kind: output, shape index: {}]  }
   0x1   :  { %7 = vsyncpa [#allocation4], 0  ;;  %s91_s6 = smov [#allocation2]   ;;  %s43_s10 = scalar_lea.hbm %s128_s0, 128 }
   0x2   :  { %s14_s7 = sshll.u32 %s91_s6, 4  ;;  %p44_p0 = scmp.ne.s32.totalorder %s128_s0, %s43_s10  ;;  %s15_s7 = int_to_ptr.vmem [resolvable:$true] %s14_s7 }
   0x3   :  { %p47_p1 = scmp.lt.u32.totalorder %s43_s10, %s128_s0 }
   0x5   :  { %p49_p2 = pnand %p47_p1, %p44_p0 }
   0x7   :  { %52 = shalt.err (!%p49_p2)
}
   0x8   :  { %s53_s15 = scalar_lea.vmem %s15_s7, 128  ;;  %p58_p4 = scmp.lt.s32.totalorder %s15_s7, %s15_s7 }
   0x9   :  { %p54_p3 = scmp.ne.s32.totalorder %s15_s7, %s53_s15  ;;  %p59_p5 = scmp.lt.s32.totalorder %s53_s15, %s53_s15 }
   0xb   :  { %p60_p6 = por %p59_p5, %p58_p4 }
   0xd   :  { %p61_p7 = pnand %p60_p6, %p54_p3 }
   0xf   :  { %64 = shalt.err (!%p61_p7)
}
  0x10   :  { %17 = dma.hbm_to_vmem [thread:$0]  %s128_s0, 128, %s15_s7, [#allocation3]  }
  0x11   :  { %87 = dma.done.wait [#allocation3], 128  }
  0x12   :  { %88 = vsyncadd [#allocation3], 4294967168  ;;  %v21_v0 = vld [vmem:[#allocation2] sm:$0xff]  ;;  %s92_s18 = smov 1   ;;  %s93_s19 = smov [#allocation5]  }
  0x13   :  { %22 = vrot.lane.b32.xlu0 %v21_v0, %s92_s18  ;;  %s31_s20 = sshll.u32 %s93_s19, 4  ;;  %s32_s20 = int_to_ptr.vmem [resolvable:$true] %s31_s20 }
  0x14   :  { %s65_s21 = scalar_lea.vmem %s32_s20, 128  ;;  %p70_p9 = scmp.lt.s32.totalorder %s32_s20, %s32_s20 }
  0x15   :  { %p66_p8 = scmp.ne.s32.totalorder %s32_s20, %s65_s21  ;;  %p71_p10 = scmp.lt.s32.totalorder %s65_s21, %s65_s21 }
  0x17   :  { %p72_p11 = por %p71_p10, %p70_p9 }
  0x19   :  { %p73_p12 = pnand %p72_p11, %p66_p8 }
  0x85   :  { %v23_v1 = vpop.permute.xlu0 %22 }
  0x86   :  { %24 = vst [vmem:[#allocation5] sm:$0xff] %v23_v1 }
  0x87   :  { %76 = shalt.err (!%p73_p12)
}
  0x88   :  { %s77_s0 = scalar_lea.hbm %s129_s1, 128 }
  0x89   :  { %p78_p13 = scmp.ne.s32.totalorder %s129_s1, %s77_s0  ;;  %p81_p0 = scmp.lt.u32.totalorder %s77_s0, %s129_s1 }
  0x8b   :  { %p83_p1 = pnand %p81_p0, %p78_p13 }
  0x8d   :  { %86 = shalt.err (!%p83_p1)
}
  0x8e   :  { %34 = dma.vmem_to_hbm [thread:$0]  %s32_s20, 128, %s129_s1, [#allocation4]  }
  0x8f   :  { %89 = dma.done.wait [#allocation4], 128  }
  0x90   :  { %90 = vsyncadd [#allocation4], 4294967168 }
  0x91   :  { %38 = vsyncpa [#allocation3], 1 }
  0x92   :  { %39 = vsyncpa [#allocation4], 1 }

</bundles_post_ra>
